<compile_context>
chip_gen: v5e
topology: v5e:2x2
jax: 0.10.0
libtpu: 0.0.40
codegen_flags: <defaults>
</compile_context>

<pallas_src>
import functools

import jax
import jax.numpy as jnp
from jax import lax
from jax.experimental import pallas as pl
from jax.experimental.pallas import tpu as pltpu


def _residual_conv_kernel(xp_ref, w_ref, b_ref, o_ref):
    # xp_ref: (BN, H+2, L)  zero-padded input; W(+halo+lane pad) and C flattened
    #                       into the lane axis, L = WP*C, a multiple of 128.
    # w_ref:  (3, L, L)     banded per-dy weight matrix (halo/pad output cols zero)
    # b_ref:  (1, L)        bias tiled over interior output cols (zero elsewhere)
    # o_ref:  (BN, H, L)    output rows (wrapper drops halo/pad columns)
    BN, HP, L = xp_ref.shape
    H = HP - 2
    rows = BN * H

    # inner = relu(conv3x3(x) + b): 3 lane-dense MXU matmuls (K = N = L = k*128);
    # bias folded into the accumulator init (no zero pass, no extra add).
    acc = jnp.broadcast_to(b_ref[...].astype(jnp.float32), (rows, L))
    for dy in range(3):                                    # static unroll
        lhs = xp_ref[:, dy:dy + H, :].reshape(rows, L)
        acc = acc + jnp.dot(lhs, w_ref[dy], preferred_element_type=jnp.float32)
    inner = jnp.maximum(acc, 0.0)

    # Residual add from the interior rows of the SAME padded tile (no 2nd input).
    resid = xp_ref[:, 1:H + 1, :].astype(jnp.float32).reshape(rows, L)
    o_ref[...] = (resid + inner).reshape(BN, H, L).astype(o_ref.dtype)


def _band_weights(w_hwio, W, WP):
    """Fold the 3 dx-taps of a 3x3 'same' conv into a banded per-dy matrix.

    Returns (3, WP*C, WP*CO) with
        M[dy, (j+dx)*C + ci, (j+1)*CO + co] = w_hwio[dy, dx, ci, co],  j in [0, W)
    so that  padded_row @ M[dy]  performs the dx/ci contraction for one dy tap
    over a whole padded image row; halo / lane-pad output columns stay zero.
    """
    KH, KW, C, CO = w_hwio.shape
    blocks = jnp.zeros((KH, WP, WP, C, CO), w_hwio.dtype)
    j = jnp.arange(W)
    for dy in range(KH):
        for dx in range(KW):
            blocks = blocks.at[dy, j + dx, j + 1].set(w_hwio[dy, dx])
    # (dy, r, q, ci, co) -> (dy, r*C + ci, q*CO + co)
    return blocks.transpose(0, 1, 3, 2, 4).reshape(KH, WP * C, WP * CO)


@functools.partial(jax.jit, static_argnames=("block_n",))
def residual_forward(x_nchw, w_hwio, b, *, block_n=None):
    """x_nchw: (N, C, H, W) float32.  Returns x + relu(conv3x3_same(x) + b), NCHW."""
    N, C, H, W = x_nchw.shape

    # Pad the halo-extended width so the flattened lane axis is a multiple of
    # 128 -> unmasked, vreg-aligned loads / matmuls / stores.
    lanes = max(128, pl.cdiv((W + 2) * C, 128) * 128)
    if lanes % C:
        lanes = (W + 2) * C          # fallback if C does not divide 128
    WP = lanes // C                  # padded column count incl. halo
    L = WP * C

    x = jnp.transpose(x_nchw, (0, 2, 3, 1))                        # NCHW -> NHWC
    # One small padded array is the ONLY tensor-sized input DMA'd into the kernel.
    xp = jnp.pad(x, ((0, 0), (1, 1), (1, WP - W - 1), (0, 0)))     # halo + lane pad
    xp = xp.reshape(N, H + 2, L)                                   # contiguous, free

    wband = _band_weights(w_hwio, W, WP)                           # (3, L, L)
    bias = jnp.zeros((L,), b.dtype).at[C:C + W * C].set(jnp.tile(b, W))
    bias = bias.reshape(1, L)

    BN = N if block_n is None else block_n                         # images per grid step
    assert N % BN == 0

    out3 = pl.pallas_call(
        _residual_conv_kernel,
        out_shape=jax.ShapeDtypeStruct((N, H, L), x.dtype),
        grid_spec=pltpu.PrefetchScalarGridSpec(
            num_scalar_prefetch=0,
            grid=(N // BN,),
            in_specs=[
                pl.BlockSpec((BN, H + 2, L), lambda n: (n, 0, 0)),
                pl.BlockSpec((3, L, L), lambda n: (0, 0, 0)),
                pl.BlockSpec((1, L), lambda n: (0, 0)),
            ],
            out_specs=pl.BlockSpec((BN, H, L), lambda n: (n, 0, 0)),
        ),
        compiler_params=pltpu.CompilerParams(
            dimension_semantics=("parallel",),
            vmem_limit_bytes=32 * 1024 * 1024),
    )(xp, wband, bias)

    out = out3.reshape(N, H, WP, C)[:, :, 1:W + 1, :]              # drop halo/pad cols
    return jnp.transpose(out, (0, 3, 1, 2))                        # NHWC -> NCHW


def _reference(x_nchw, w_hwio, b):
    """Pure-JAX reference: x + relu(conv3x3_same(x) + b)."""
    x = jnp.transpose(x_nchw, (0, 2, 3, 1))
    y = lax.conv_general_dilated(
        x, w_hwio, window_strides=(1, 1), padding="SAME",
        dimension_numbers=("NHWC", "HWIO", "NHWC"))
    y = jnp.maximum(y + b.reshape(1, 1, 1, -1), 0.0)
    return jnp.transpose(x + y, (0, 3, 1, 2))


if __name__ == "__main__":
    key = jax.random.PRNGKey(0)
    kx, kw, kb = jax.random.split(key, 3)

    N, C, H, W = 2, 4, 16, 16
    x = jax.random.normal(kx, (N, C, H, W), dtype=jnp.float32)

    # Deterministic parameter init (Conv2d(C, C, 3, padding=1)); weights in HWIO.
    fan_in = C * 3 * 3
    w = jax.random.normal(kw, (3, 3, C, C), dtype=jnp.float32) * (1.0 / fan_in) ** 0.5
    b = jax.random.normal(kb, (C,), dtype=jnp.float32) * 0.01

    out = jax.block_until_ready(residual_forward(x, w, b))
    ref = jax.block_until_ready(_reference(x, w, b))

    assert out.shape == (N, C, H, W) and out.dtype == jnp.float32
    assert jnp.allclose(out, ref, atol=1e-5, rtol=1e-5)
    print("KERNEL_OK")
</pallas_src>

<mosaic_0001>
module attributes {stable_mosaic.version = 11 : i64} {
  func.func @_residual_conv_kernel(%arg0: i32, %arg1: memref<2x18x128xf32, #tpu.memory_space<vmem>>, %arg2: memref<3x128x128xf32, #tpu.memory_space<vmem>>, %arg3: memref<1x128xf32, #tpu.memory_space<vmem>>, %arg4: memref<2x16x128xf32, #tpu.memory_space<vmem>>) attributes {dimension_semantics = [#tpu.dimension_semantics<parallel>], iteration_bounds = array<i64: 1>, scalar_prefetch = 0 : i64, scratch_operands = 0 : i64, tpu.core_type = #tpu.core_type<tc>, window_params = [{transform_indices = @transform_0, window_bounds = array<i64: 2, 18, 128>}, {pipeline_mode = #tpu.pipeline_mode<synchronous>, transform_indices = @transform_1, window_bounds = array<i64: 3, 128, 128>}, {pipeline_mode = #tpu.pipeline_mode<synchronous>, transform_indices = @transform_2, window_bounds = array<i64: 1, 128>}, {transform_indices = @transform_3, window_bounds = array<i64: 2, 16, 128>}]} {
    %c0 = arith.constant 0 : index
    %c0_0 = arith.constant 0 : index
    %0 = vector.load %arg3[%c0, %c0_0] : memref<1x128xf32, #tpu.memory_space<vmem>>, vector<1x128xf32>
    %1 = vector.shape_cast %0 : vector<1x128xf32> to vector<1x128xf32>
    %2 = vector.broadcast %1 : vector<1x128xf32> to vector<32x128xf32>
    %c0_1 = arith.constant 0 : index
    %c0_2 = arith.constant 0 : index
    %c0_3 = arith.constant 0 : index
    %3 = vector.load %arg1[%c0_1, %c0_2, %c0_3] : memref<2x18x128xf32, #tpu.memory_space<vmem>>, vector<2x16x128xf32>
    %4 = vector.shape_cast %3 : vector<2x16x128xf32> to vector<32x128xf32>
    %c0_4 = arith.constant 0 : index
    %c0_5 = arith.constant 0 : index
    %c0_6 = arith.constant 0 : index
    %5 = vector.load %arg2[%c0_4, %c0_5, %c0_6] : memref<3x128x128xf32, #tpu.memory_space<vmem>>, vector<1x128x128xf32>
    %6 = vector.shape_cast %5 : vector<1x128x128xf32> to vector<128x128xf32>
    %cst = arith.constant dense<0.000000e+00> : vector<32x128xf32>
    %7 = tpu.matmul %4, %6, %cst {dimension_numbers = #tpu.dot_dimension_numbers<[1], [0], [0], [1], [0, 0, 1, 1], [], []>} : vector<32x128xf32>, vector<128x128xf32>, vector<32x128xf32> -> vector<32x128xf32>
    %8 = arith.addf %2, %7 : vector<32x128xf32>
    %c0_7 = arith.constant 0 : index
    %c1 = arith.constant 1 : index
    %c0_8 = arith.constant 0 : index
    %9 = vector.load %arg1[%c0_7, %c1, %c0_8] : memref<2x18x128xf32, #tpu.memory_space<vmem>>, vector<2x16x128xf32>
    %10 = vector.shape_cast %9 : vector<2x16x128xf32> to vector<32x128xf32>
    %c1_9 = arith.constant 1 : index
    %c0_10 = arith.constant 0 : index
    %c0_11 = arith.constant 0 : index
    %11 = vector.load %arg2[%c1_9, %c0_10, %c0_11] : memref<3x128x128xf32, #tpu.memory_space<vmem>>, vector<1x128x128xf32>
    %12 = vector.shape_cast %11 : vector<1x128x128xf32> to vector<128x128xf32>
    %cst_12 = arith.constant dense<0.000000e+00> : vector<32x128xf32>
    %13 = tpu.matmul %10, %12, %cst_12 {dimension_numbers = #tpu.dot_dimension_numbers<[1], [0], [0], [1], [0, 0, 1, 1], [], []>} : vector<32x128xf32>, vector<128x128xf32>, vector<32x128xf32> -> vector<32x128xf32>
    %14 = arith.addf %8, %13 : vector<32x128xf32>
    %c0_13 = arith.constant 0 : index
    %c2 = arith.constant 2 : index
    %c0_14 = arith.constant 0 : index
    %15 = vector.load %arg1[%c0_13, %c2, %c0_14] : memref<2x18x128xf32, #tpu.memory_space<vmem>>, vector<2x16x128xf32>
    %16 = vector.shape_cast %15 : vector<2x16x128xf32> to vector<32x128xf32>
    %c2_15 = arith.constant 2 : index
    %c0_16 = arith.constant 0 : index
    %c0_17 = arith.constant 0 : index
    %17 = vector.load %arg2[%c2_15, %c0_16, %c0_17] : memref<3x128x128xf32, #tpu.memory_space<vmem>>, vector<1x128x128xf32>
    %18 = vector.shape_cast %17 : vector<1x128x128xf32> to vector<128x128xf32>
    %cst_18 = arith.constant dense<0.000000e+00> : vector<32x128xf32>
    %19 = tpu.matmul %16, %18, %cst_18 {dimension_numbers = #tpu.dot_dimension_numbers<[1], [0], [0], [1], [0, 0, 1, 1], [], []>} : vector<32x128xf32>, vector<128x128xf32>, vector<32x128xf32> -> vector<32x128xf32>
    %20 = arith.addf %14, %19 : vector<32x128xf32>
    %cst_19 = arith.constant 0.000000e+00 : f32
    %21 = vector.broadcast %cst_19 : f32 to vector<32x128xf32>
    %22 = arith.maximumf %20, %21 : vector<32x128xf32>
    %c0_20 = arith.constant 0 : index
    %c1_21 = arith.constant 1 : index
    %c0_22 = arith.constant 0 : index
    %23 = vector.load %arg1[%c0_20, %c1_21, %c0_22] : memref<2x18x128xf32, #tpu.memory_space<vmem>>, vector<2x16x128xf32>
    %24 = vector.shape_cast %23 : vector<2x16x128xf32> to vector<32x128xf32>
    %25 = arith.addf %24, %22 : vector<32x128xf32>
    %26 = vector.shape_cast %25 : vector<32x128xf32> to vector<2x16x128xf32>
    %c0_23 = arith.constant 0 : index
    %c0_24 = arith.constant 0 : index
    %c0_25 = arith.constant 0 : index
    %27 = vector.load %arg4[%c0_23, %c0_24, %c0_25] : memref<2x16x128xf32, #tpu.memory_space<vmem>>, vector<2x16x128xf32>
    tpu.vector_store %arg4[%c0_23, %c0_24, %c0_25], %26 {strides = array<i32>} : memref<2x16x128xf32, #tpu.memory_space<vmem>>, vector<2x16x128xf32>,
    return
  }
  func.func @transform_0(%arg0: i32) -> (i32, i32, i32) {
    %c0_i32 = arith.constant 0 : i32
    %c0_i32_0 = arith.constant 0 : i32
    %c0_i32_1 = arith.constant 0 : i32
    return %arg0, %c0_i32, %c0_i32_0 : i32, i32, i32
  }
  func.func @transform_1(%arg0: i32) -> (i32, i32, i32) {
    %c0_i32 = arith.constant 0 : i32
    %c0_i32_0 = arith.constant 0 : i32
    %c0_i32_1 = arith.constant 0 : i32
    %c0_i32_2 = arith.constant 0 : i32
    return %c0_i32, %c0_i32_0, %c0_i32_1 : i32, i32, i32
  }
  func.func @transform_2(%arg0: i32) -> (i32, i32) {
    %c0_i32 = arith.constant 0 : i32
    %c0_i32_0 = arith.constant 0 : i32
    %c0_i32_1 = arith.constant 0 : i32
    return %c0_i32, %c0_i32_0 : i32, i32
  }
  func.func @transform_3(%arg0: i32) -> (i32, i32, i32) {
    %c0_i32 = arith.constant 0 : i32
    %c0_i32_0 = arith.constant 0 : i32
    %c0_i32_1 = arith.constant 0 : i32
    return %arg0, %c0_i32, %c0_i32_0 : i32, i32, i32
  }
}

</mosaic_0001>

<bundles_post_ra>
// kernel: tile.8
= control target key start
LH: loop header
LB: loop body
LE: loop exit
PB: predicated region body
PF: predicated region fallthrough
CT: control target
= control target key end

     0   :  { %s28_s0 = inlined_call_operand.vmem [shape: f32[4], index: 0, kind: input, shape index: {}]   ;;  %s29_s1 = inlined_call_operand.vmem [shape: f32[16,4], index: 1, kind: output, shape index: {}]  }
   0x1   :  { %v4_v0 = vld [vmem:[%s28_s0] ss:$0 sm:$0xff] }
   0x2   :  { %5 = vst [vmem:[%s29_s1] sm:$0xff] %v4_v0 }
   0x3   :  { %8 = vst [vmem:[%s29_s1 + $0x8] sm:$0xff] %v4_v0 }

// kernel: residual_forward.1
= control target key start
LH: loop header
LB: loop body
LE: loop exit
PB: predicated region body
PF: predicated region fallthrough
CT: control target
= control target key end

     0   :  { %s459_s1 = inlined_call_operand.vmem [shape: f32[3,128,128], index: 1, kind: input, shape index: {}]   ;;  %s460_s2 = inlined_call_operand.vmem [shape: f32[1,128], index: 2, kind: input, shape index: {}]   ;;  %s461_s0 = inlined_call_operand.vmem [shape: f32[2,18,128], index: 0, kind: input, shape index: {}]   ;;  %s462_s3 = inlined_call_operand.vmem [shape: f32[2,16,128], index: 3, kind: output, shape index: {}]  }
   0x1   :  { %v226_v0 = vld [vmem:[%s459_s1 + $0x178] sm:$0xff]  ;;  %v225_v2 = vld [vmem:[%s459_s1 + $0x170] sm:$0xff]  ;;  %v224_v5 = vld [vmem:[%s459_s1 + $0x168] sm:$0xff] }
   0x2   :  { %v37_v1 = vld [vmem:[%s459_s1 + $0x78] sm:$0xff]  ;;  %146 = vmatpush.msra.mxu2 %v226_v0  ;;  %v36_v3 = vld [vmem:[%s459_s1 + $0x70] sm:$0xff]  ;;  %v35_v6 = vld [vmem:[%s459_s1 + $0x68] sm:$0xff] }
   0x3   :  { %38 = vmatpush.msra.mxu0 %v37_v1  ;;  %v210_v4 = vld [vmem:[%s459_s1 + $0xf8] sm:$0xff]  ;;  %227 = vmatpush.msra.mxu3 %v37_v1  ;;  %v209_v7 = vld [vmem:[%s459_s1 + $0xf0] sm:$0xff]  ;;  %v208_v8 = vld [vmem:[%s459_s1 + $0xe8] sm:$0xff] }
   0x4   :  { %92 = vmatpush.msra.mxu1 %v210_v4  ;;  %147 = vmatpush.msra.mxu2 %v225_v2  ;;  %v223_v9 = vld [vmem:[%s459_s1 + $0x160] sm:$0xff]  ;;  %v222_v12 = vld [vmem:[%s459_s1 + $0x158] sm:$0xff]  ;;  %v221_v15 = vld [vmem:[%s459_s1 + $0x150] sm:$0xff] }
   0x5   :  { %39 = vmatpush.msra.mxu0 %v36_v3  ;;  %228 = vmatpush.msra.mxu3 %v36_v3  ;;  %v34_v10 = vld [vmem:[%s459_s1 + $0x60] sm:$0xff]  ;;  %v33_v13 = vld [vmem:[%s459_s1 + $0x58] sm:$0xff]  ;;  %v32_v16 = vld [vmem:[%s459_s1 + $0x50] sm:$0xff] }
   0x6   :  { %93 = vmatpush.msra.mxu1 %v209_v7  ;;  %148 = vmatpush.msra.mxu2 %v224_v5  ;;  %v207_v11 = vld [vmem:[%s459_s1 + $0xe0] sm:$0xff]  ;;  %v206_v14 = vld [vmem:[%s459_s1 + $0xd8] sm:$0xff]  ;;  %v205_v17 = vld [vmem:[%s459_s1 + $0xd0] sm:$0xff] }
   0x7   :  { %40 = vmatpush.msra.mxu0 %v35_v6  ;;  %229 = vmatpush.msra.mxu3 %v35_v6  ;;  %v220_v18 = vld [vmem:[%s459_s1 + $0x148] sm:$0xff]  ;;  %v219_v21 = vld [vmem:[%s459_s1 + $0x140] sm:$0xff]  ;;  %v218_v24 = vld [vmem:[%s459_s1 + $0x138] sm:$0xff] }
   0x8   :  { %94 = vmatpush.msra.mxu1 %v208_v8  ;;  %149 = vmatpush.msra.mxu2 %v223_v9  ;;  %v31_v19 = vld [vmem:[%s459_s1 + $0x48] sm:$0xff]  ;;  %v30_v22 = vld [vmem:[%s459_s1 + $0x40] sm:$0xff]  ;;  %v29_v25 = vld [vmem:[%s459_s1 + $0x38] sm:$0xff] }
   0x9   :  { %41 = vmatpush.msra.mxu0 %v34_v10  ;;  %230 = vmatpush.msra.mxu3 %v34_v10  ;;  %v204_v20 = vld [vmem:[%s459_s1 + $0xc8] sm:$0xff]  ;;  %v203_v23 = vld [vmem:[%s459_s1 + $0xc0] sm:$0xff]  ;;  %v202_v26 = vld [vmem:[%s459_s1 + $0xb8] sm:$0xff] }
   0xa   :  { %95 = vmatpush.msra.mxu1 %v207_v11  ;;  %150 = vmatpush.msra.mxu2 %v222_v12  ;;  %v217_v27 = vld [vmem:[%s459_s1 + $0x130] sm:$0xff]  ;;  %v216_v30 = vld [vmem:[%s459_s1 + $0x128] sm:$0xff]  ;;  %v215_v33 = vld [vmem:[%s459_s1 + $0x120] sm:$0xff] }
   0xb   :  { %42 = vmatpush.msra.mxu0 %v33_v13  ;;  %231 = vmatpush.msra.mxu3 %v33_v13  ;;  %v28_v28 = vld [vmem:[%s459_s1 + $0x30] sm:$0xff]  ;;  %v27_v31 = vld [vmem:[%s459_s1 + $0x28] sm:$0xff]  ;;  %v26_v34 = vld [vmem:[%s459_s1 + $0x20] sm:$0xff] }
   0xc   :  { %96 = vmatpush.msra.mxu1 %v206_v14  ;;  %151 = vmatpush.msra.mxu2 %v221_v15  ;;  %v201_v29 = vld [vmem:[%s459_s1 + $0xb0] sm:$0xff]  ;;  %v200_v32 = vld [vmem:[%s459_s1 + $0xa8] sm:$0xff]  ;;  %v199_v35 = vld [vmem:[%s459_s1 + $0xa0] sm:$0xff] }
   0xd   :  { %43 = vmatpush.msra.mxu0 %v32_v16  ;;  %232 = vmatpush.msra.mxu3 %v32_v16  ;;  %v214_v36 = vld [vmem:[%s459_s1 + $0x118] sm:$0xff]  ;;  %v213_v39 = vld [vmem:[%s459_s1 + $0x110] sm:$0xff]  ;;  %v212_v42 = vld [vmem:[%s459_s1 + $0x108] sm:$0xff] }
   0xe   :  { %97 = vmatpush.msra.mxu1 %v205_v17  ;;  %152 = vmatpush.msra.mxu2 %v220_v18  ;;  %v25_v37 = vld [vmem:[%s459_s1 + $0x18] sm:$0xff]  ;;  %v24_v40 = vld [vmem:[%s459_s1 + $0x10] sm:$0xff]  ;;  %v23_v43 = vld [vmem:[%s459_s1 + $0x8] sm:$0xff] }
   0xf   :  { %44 = vmatpush.msra.mxu0 %v31_v19  ;;  %233 = vmatpush.msra.mxu3 %v31_v19  ;;  %v198_v38 = vld [vmem:[%s459_s1 + $0x98] sm:$0xff]  ;;  %v197_v41 = vld [vmem:[%s459_s1 + $0x90] sm:$0xff]  ;;  %v196_v44 = vld [vmem:[%s459_s1 + $0x88] sm:$0xff] }
  0x10   :  { %98 = vmatpush.msra.mxu1 %v204_v20  ;;  %153 = vmatpush.msra.mxu2 %v219_v21  ;;  %v211_v45 = vld [vmem:[%s459_s1 + $0x100] sm:$0xff]  ;;  %v19_v50 = vld [vmem:[%s461_s0 + $0x8] sm:$0xff]  ;;  %v20_v53 = vld [vmem:[%s461_s0 + $0x18] sm:$0xff] }
  0x11   :  { %45 = vmatpush.msra.mxu0 %v30_v22  ;;  %234 = vmatpush.msra.mxu3 %v30_v22  ;;  %v22_v46 = vld [vmem:[%s459_s1] sm:$0xff]  ;;  %v126_v52 = vld [vmem:[%s461_s0 + $0xa] sm:$0xff] }
  0x12   :  { %99 = vmatpush.msra.mxu1 %v203_v23  ;;  %154 = vmatpush.msra.mxu2 %v218_v24  ;;  %v125_v47 = vld [vmem:[%s461_s0 + $0x2] sm:$0xff]  ;;  %v127_v55 = vld [vmem:[%s461_s0 + $0x1a] sm:$0xff] }
  0x13   :  { %46 = vmatpush.msra.mxu0 %v29_v25  ;;  %235 = vmatpush.msra.mxu3 %v29_v25  ;;  %v18_v48 = vld [vmem:[%s461_s0] sm:$0xff]  ;;  %v72_v54 = vld [vmem:[%s461_s0 + $0x9] sm:$0xff] }
  0x14   :  { %100 = vmatpush.msra.mxu1 %v202_v26  ;;  %155 = vmatpush.msra.mxu2 %v217_v27  ;;  %v195_v49 = vld [vmem:[%s459_s1 + $0x80] sm:$0xff] }
  0x15   :  { %47 = vmatpush.msra.mxu0 %v28_v28  ;;  %236 = vmatpush.msra.mxu3 %v28_v28  ;;  %v71_v51 = vld [vmem:[%s461_s0 + $0x1] sm:$0xff]  ;;  %v73_v57 = vld [vmem:[%s461_s0 + $0x19] sm:$0xff] }
  0x16   :  { %101 = vmatpush.msra.mxu1 %v201_v29  ;;  %156 = vmatpush.msra.mxu2 %v216_v30  ;;  %v21_v56 = vld [vmem:[%s461_s0 + $0x20] sm:$0xff] }
  0x17   :  { %48 = vmatpush.msra.mxu0 %v27_v31  ;;  %237 = vmatpush.msra.mxu3 %v27_v31  ;;  %v128_v58 = vld [vmem:[%s461_s0 + $0x22] sm:$0xff]  ;;  %v243_v60 = vld [vmem:[%s460_s2] ss:$0 sm:$0xff] }
  0x18   :  { %102 = vmatpush.msra.mxu1 %v200_v32  ;;  %157 = vmatpush.msra.mxu2 %v215_v33  ;;  %v74_v59 = vld [vmem:[%s461_s0 + $0x21] sm:$0xff] }
  0x19   :  { %49 = vmatpush.msra.mxu0 %v26_v34  ;;  %238 = vmatpush.msra.mxu3 %v26_v34 }
  0x1a   :  { %103 = vmatpush.msra.mxu1 %v199_v35  ;;  %158 = vmatpush.msra.mxu2 %v214_v36 }
  0x1b   :  { %50 = vmatpush.msra.mxu0 %v25_v37  ;;  %239 = vmatpush.msra.mxu3 %v25_v37 }
  0x1c   :  { %104 = vmatpush.msra.mxu1 %v198_v38  ;;  %159 = vmatpush.msra.mxu2 %v213_v39 }
  0x1d   :  { %51 = vmatpush.msra.mxu0 %v24_v40  ;;  %240 = vmatpush.msra.mxu3 %v24_v40 }
  0x1e   :  { %105 = vmatpush.msra.mxu1 %v197_v41  ;;  %160 = vmatpush.msra.mxu2 %v212_v42 }
  0x1f   :  { %52 = vmatpush.msra.mxu0 %v23_v43  ;;  %241 = vmatpush.msra.mxu3 %v23_v43 }
  0x20   :  { %106 = vmatpush.msra.mxu1 %v196_v44  ;;  %161 = vmatpush.msra.mxu2 %v211_v45 }
  0x21   :  { %53 = vmatpush.msra.mxu0 %v22_v46  ;;  %162 = vmatmul.f32.vlgmr.msra.gmra.mxu2 %v125_v47 }
  0x22   :  { %54 = vmatmul.f32.vlgmr.msra.gmra.mxu0 %v18_v48  ;;  %242 = vmatpush.msra.mxu3 %v22_v46 }
  0x23   :  { %107 = vmatpush.msra.mxu1 %v195_v49  ;;  %57 = vmatmul.f32.vlgmr.msra.gmra.mxu3 %v19_v50 }
  0x24   :  { %108 = vmatmul.f32.vlgmr.msra.gmra.mxu1 %v71_v51 }
  0x29   :  { %165 = vmatmul.f32.gmra.mxu2 %v126_v52 }
  0x2b   :  { %60 = vmatmul.f32.gmra.mxu3 %v20_v53 }
  0x2c   :  { %111 = vmatmul.f32.gmra.mxu1 %v72_v54 }
  0x31   :  { %168 = vmatmul.f32.gmra.mxu2 %v127_v55 }
  0x33   :  { %63 = vmatmul.f32.gmra.mxu3 %v21_v56 }
  0x34   :  { %114 = vmatmul.f32.gmra.mxu1 %v73_v57 }
  0x39   :  { %171 = vmatmul.f32.gmra.mxu2 %v128_v58 }
  0x3c   :  { %117 = vmatmul.f32.gmra.mxu1 %v74_v59 }
  0x9f   :  { %v55_v61 = vpop.f32.mrf.mxu0 }
  0xa0   :  { %v67_v62 = vadd.f32 %v243_v60, %v55_v61 }
  0xa1   :  { %v109_v63 = vpop.f32.mrf.mxu1 }
  0xa2   :  { %v121_v0 = vadd.f32 %v109_v63, %v67_v62 }
  0xa4   :  { %v163_v1 = vpop.f32.mrf.mxu2 }
  0xa5   :  { %v175_v2 = vadd.f32 %v163_v1, %v121_v0 }
  0xa6   :  { %v58_v3 = vpop.f32.mrf.mxu3 }
  0xa7   :  { %v179_v4 = vmax.f32 %v175_v2, 0.0  ;;  %v68_v5 = vadd.f32 %v243_v60, %v58_v3 }
  0xa9   :  { %v112_v6 = vpop.f32.mrf.mxu1  ;;  %v183_v7 = vadd.f32 %v179_v4, %v71_v51 }
  0xaa   :  { %v122_v8 = vadd.f32 %v112_v6, %v68_v5 }
  0xab   :  { %187 = vst [vmem:[%s462_s3] sm:$0xff] %v183_v7 }
  0xac   :  { %v166_v9 = vpop.f32.mrf.mxu2 }
  0xad   :  { %v176_v10 = vadd.f32 %v166_v9, %v122_v8 }
  0xae   :  { %v61_v11 = vpop.f32.mrf.mxu3 }
  0xaf   :  { %v180_v12 = vmax.f32 %v176_v10, 0.0  ;;  %v69_v13 = vadd.f32 %v243_v60, %v61_v11 }
  0xb1   :  { %v115_v14 = vpop.f32.mrf.mxu1  ;;  %v184_v15 = vadd.f32 %v180_v12, %v72_v54 }
  0xb2   :  { %v123_v16 = vadd.f32 %v115_v14, %v69_v13 }
  0xb3   :  { %188 = vst [vmem:[%s462_s3 + $0x8] sm:$0xff] %v184_v15 }
  0xb4   :  { %v169_v17 = vpop.f32.mrf.mxu2 }
  0xb5   :  { %v177_v18 = vadd.f32 %v169_v17, %v123_v16 }
  0xb6   :  { %v64_v19 = vpop.f32.mrf.mxu3 }
  0xb7   :  { %v181_v20 = vmax.f32 %v177_v18, 0.0  ;;  %v70_v21 = vadd.f32 %v243_v60, %v64_v19 }
  0xb9   :  { %v118_v22 = vpop.f32.mrf.mxu1  ;;  %v185_v23 = vadd.f32 %v181_v20, %v73_v57 }
  0xba   :  { %v124_v24 = vadd.f32 %v118_v22, %v70_v21 }
  0xbb   :  { %189 = vst [vmem:[%s462_s3 + $0x10] sm:$0xff] %v185_v23 }
  0xbc   :  { %v172_v25 = vpop.f32.mrf.mxu2 }
  0xbd   :  { %v178_v26 = vadd.f32 %v172_v25, %v124_v24 }
  0xbf   :  { %v182_v27 = vmax.f32 %v178_v26, 0.0 }
  0xc1   :  { %v186_v28 = vadd.f32 %v182_v27, %v74_v59 }
  0xc3   :  { %190 = vst [vmem:[%s462_s3 + $0x18] sm:$0xff] %v186_v28 }

</bundles_post_ra>
